<compile_context>
chip_gen: v7x
topology: tpu7x:2x2x1
jax: 0.10.0
libtpu: 0.0.40
codegen_flags: <defaults>
</compile_context>

<pallas_src>
import jax
import jax.numpy as jnp
from jax.experimental import pallas as pl
from jax.experimental.pallas import tpu as pltpu

_LANE = 128

# Fixed op table from the PyTorch module (NOTE: the module's KERNEL_SIZE=49
# constant is unused there; the real kernel size is 3, taken from op_dic).
_OP_TABLE = {
    "order1_MA": (0.5, 0.0, 0.5),
    "order2_MA": (1.0 / 3.0, 1.0 / 3.0, 1.0 / 3.0),
    "order1_DF": (-1.0, 0.0, 1.0),
    "order2_DF": (-1.0, 2.0, -1.0),
}


def _round_up(x, m):
    return ((x + m - 1) // m) * m


def _make_conv1d_3tap_kernel(w0, w1, w2, logical_l):
    """3-tap 'same' stencil along the lane axis; taps & row length are static."""

    def kernel(x_ref, o_ref):
        x = x_ref[...].astype(jnp.float32)
        lp = x.shape[-1]  # static physical row width of this block

        if lp % _LANE == 0:
            # Lane-aligned physical rows (possibly several packed logical rows
            # of length `logical_l` each): cyclic lane roll + edge masks.
            # Iota is a (1, lp) lane-only row; jnp.where broadcasts it.
            idx = jax.lax.broadcasted_iota(jnp.int32, (1, lp), 1)
            if lp == logical_l:
                left_edge = idx == 0
                right_edge = idx == lp - 1
            else:  # packed rows: mask every seam between logical rows
                pos = idx % logical_l
                left_edge = pos == 0
                right_edge = pos == logical_l - 1

            acc = w1 * x if w1 != 0.0 else jnp.zeros_like(x)
            if w0 != 0.0:
                # x_prev[i] = x[i-1], zeroed at each logical-row start.
                x_prev = jnp.where(left_edge, 0.0, pltpu.roll(x, shift=1, axis=1))
                acc = acc + w0 * x_prev
            if w2 != 0.0:
                # x_next[i] = x[i+1] (roll by lp-1 == roll by -1), zeroed at ends.
                x_next = jnp.where(right_edge, 0.0,
                                   pltpu.roll(x, shift=lp - 1, axis=1))
                acc = acc + w2 * x_next
        else:
            # Unaligned row width (full-extent last-dim block): shifted
            # neighbours via a zero column + static slices; no masks needed.
            acc = w1 * x if w1 != 0.0 else jnp.zeros_like(x)
            if w0 != 0.0 or w2 != 0.0:
                zcol = jnp.zeros((x.shape[0], 1), dtype=x.dtype)
            if w0 != 0.0:
                x_prev = jnp.concatenate([zcol, x[:, : lp - 1]], axis=1)
                acc = acc + w0 * x_prev
            if w2 != 0.0:
                x_next = jnp.concatenate([x[:, 1:], zcol], axis=1)
                acc = acc + w2 * x_next

        o_ref[...] = acc.astype(o_ref.dtype)

    return kernel


def signal_filter(x, kernel_op="order1_MA", taps=None,
                  target_tile_bytes=2 * 1024 * 1024):
    """Forward of `signal_filter_`: x (N, 1, L) -> (N, 1, L).

    `kernel_op` selects the module's fixed 3-tap table; `taps` (3 Python
    floats) may override it.  No host syncs: safe to wrap in
    jax.jit(signal_filter, static_argnames=("kernel_op", "taps")).
    """
    assert x.ndim == 3 and x.shape[1] == 1, "expects NCL input with C == 1"
    N, _, L = x.shape
    w0, w1, w2 = (float(v) for v in (taps if taps is not None
                                     else _OP_TABLE[kernel_op]))

    x2d = x.reshape(N, L)

    # ---- layout (no extra HBM passes; reshapes are contiguous) -------------
    total = N * L
    if L % _LANE != 0 and L < _LANE and _LANE % L == 0 and total % _LANE == 0:
        # Pack 128//L logical rows into each 128-lane physical row.
        x2d = x2d.reshape(total // _LANE, _LANE)
    rows, lp = x2d.shape

    # ---- tiling -------------------------------------------------------------
    itemsize = jnp.dtype(x.dtype).itemsize
    sublane = max(8, 32 // itemsize)          # 8 (f32) / 16 (bf16) / 32 (int8)
    row_bytes = lp * itemsize

    # Byte-targeted tile rows (~2 MiB per buffer) to amortize per-step overhead;
    # 2 in + 2 out double-buffered tiles stay around ~8 MiB total.
    tn = max(sublane, (target_tile_bytes // row_bytes) // sublane * sublane)
    # v7x megacore: guarantee >= 2 grid blocks whenever rows allow a split.
    tn = min(tn, _round_up(pl.cdiv(rows, 2), sublane))
    if tn >= rows:
        tn = rows                              # single full-extent block
    grid = (pl.cdiv(rows, tn),)
    # TODO(synk): rows so long that one row exceeds the tile budget would need an L grid axis with a 1-element halo; not implemented here.

    footprint = 4 * tn * row_bytes             # double-buffered in + out tiles
    vmem_limit = min(128 * 1024 * 1024,
                     max(32 * 1024 * 1024, footprint + (4 << 20)))

    kernel = _make_conv1d_3tap_kernel(w0, w1, w2, L)
    out2d = pl.pallas_call(
        kernel,
        out_shape=jax.ShapeDtypeStruct((rows, lp), x.dtype),
        grid=grid,
        in_specs=[pl.BlockSpec((tn, lp), lambda i: (i, 0))],
        out_specs=pl.BlockSpec((tn, lp), lambda i: (i, 0)),
        compiler_params=pltpu.CompilerParams(
            dimension_semantics=("parallel",),
            vmem_limit_bytes=vmem_limit,
        ),
        cost_estimate=pl.CostEstimate(
            flops=5 * rows * lp,
            transcendentals=0,
            bytes_accessed=2 * rows * lp * itemsize,
        ),
    )(x2d)

    return out2d.reshape(N, 1, L)


def _reference(x, taps):
    # Pure-JAX reference: zero-padded cross-correlation, same as F.conv1d here.
    w0, w1, w2 = taps
    xp = jnp.pad(x[:, 0, :], ((0, 0), (1, 1)))
    return (w0 * xp[:, :-2] + w1 * xp[:, 1:-1] + w2 * xp[:, 2:])[:, None, :]


if __name__ == "__main__":
    key = jax.random.PRNGKey(0)
    k1, k2, k3, k4 = jax.random.split(key, 4)

    # Small shapes consistent with the module, covering every layout path:
    #   (2, 1, 16)   tiny unaligned rows  -> full-extent (2, 16) block
    #   (64, 1, 16)  packed: 8 logical rows per 128-lane physical row
    #   (32, 1, 256) lane-aligned rows    -> 2-block "parallel" grid
    #   (16, 1, 200) unaligned rows       -> full-extent last-dim, 2-block grid
    inputs = [
        jax.random.normal(k1, (2, 1, 16), dtype=jnp.float32),
        jax.random.normal(k2, (64, 1, 16), dtype=jnp.float32),
        jax.random.normal(k3, (32, 1, 256), dtype=jnp.float32),
        jax.random.normal(k4, (16, 1, 200), dtype=jnp.float32),
    ]

    filt = jax.jit(signal_filter,
                   static_argnames=("kernel_op", "taps", "target_tile_bytes"))

    for op in ("order1_MA", "order2_MA", "order1_DF", "order2_DF"):
        for xin in inputs:
            y = jax.block_until_ready(filt(xin, kernel_op=op))
            ref = _reference(xin, _OP_TABLE[op])
            assert y.shape == xin.shape, (op, y.shape, xin.shape)
            assert jnp.allclose(y, ref, atol=1e-5, rtol=1e-5), \
                f"mismatch: {op} {xin.shape}"

    print("KERNEL_OK")
</pallas_src>

<mosaic_0001>
module attributes {stable_mosaic.version = 11 : i64} {
  func.func @kernel(%arg0: i32, %arg1: memref<2x16xf32, #tpu.memory_space<vmem>>, %arg2: memref<2x16xf32, #tpu.memory_space<vmem>>) attributes {dimension_semantics = [#tpu.dimension_semantics<parallel>], iteration_bounds = array<i64: 1>, scalar_prefetch = 0 : i64, scratch_operands = 0 : i64, tpu.core_type = #tpu.core_type<tc>, window_params = [{transform_indices = @transform_0, window_bounds = array<i64: 2, 16>}, {transform_indices = @transform_1, window_bounds = array<i64: 2, 16>}]} {
    %c0 = arith.constant 0 : index
    %c0_0 = arith.constant 0 : index
    %0 = vector.load %arg1[%c0, %c0_0] : memref<2x16xf32, #tpu.memory_space<vmem>>, vector<2x16xf32>
    %cst = arith.constant 0.000000e+00 : f32
    %1 = vector.broadcast %cst : f32 to vector<2x16xf32>
    %cst_1 = arith.constant 0.000000e+00 : f32
    %2 = vector.broadcast %cst_1 : f32 to vector<2x1xf32>
    %3 = vector.extract_strided_slice %0 {offsets = [0, 0], sizes = [2, 15], strides = [1, 1]} : vector<2x16xf32> to vector<2x15xf32>
    %4 = tpu.concatenate %2, %3 in 1 : vector<2x1xf32>, vector<2x15xf32> -> vector<2x16xf32>
    %cst_2 = arith.constant 5.000000e-01 : f32
    %5 = vector.broadcast %cst_2 : f32 to vector<2x16xf32>
    %6 = arith.mulf %5, %4 : vector<2x16xf32>
    %7 = arith.addf %1, %6 : vector<2x16xf32>
    %8 = vector.extract_strided_slice %0 {offsets = [0, 1], sizes = [2, 15], strides = [1, 1]} : vector<2x16xf32> to vector<2x15xf32>
    %9 = tpu.concatenate %8, %2 in 1 : vector<2x15xf32>, vector<2x1xf32> -> vector<2x16xf32>
    %cst_3 = arith.constant 5.000000e-01 : f32
    %10 = vector.broadcast %cst_3 : f32 to vector<2x16xf32>
    %11 = arith.mulf %10, %9 : vector<2x16xf32>
    %12 = arith.addf %7, %11 : vector<2x16xf32>
    %c0_4 = arith.constant 0 : index
    %c0_5 = arith.constant 0 : index
    %13 = vector.load %arg2[%c0_4, %c0_5] : memref<2x16xf32, #tpu.memory_space<vmem>>, vector<2x16xf32>
    tpu.vector_store %arg2[%c0_4, %c0_5], %12 {strides = array<i32>} : memref<2x16xf32, #tpu.memory_space<vmem>>, vector<2x16xf32>,
    return
  }
  func.func @transform_0(%arg0: i32) -> (i32, i32) {
    %c0_i32 = arith.constant 0 : i32
    %c0_i32_0 = arith.constant 0 : i32
    return %arg0, %c0_i32 : i32, i32
  }
  func.func @transform_1(%arg0: i32) -> (i32, i32) {
    %c0_i32 = arith.constant 0 : i32
    %c0_i32_0 = arith.constant 0 : i32
    return %arg0, %c0_i32 : i32, i32
  }
}

</mosaic_0001>

<bundles_post_ra>
// kernel: signal_filter.1
= control target key start
LH: loop header
LB: loop body
LE: loop exit
PB: predicated region body
PF: predicated region fallthrough
CT: control target
= control target key end

     0   :  { %s68_s8 = smov 1   ;;  %s96_s0 = inlined_call_operand.vmem [shape: f32[2,16], index: 0, kind: input, shape index: {}]   ;;  %s97_s1 = inlined_call_operand.hbm [shape: f32[2,16], index: 1, kind: output, shape index: {}]  }
   0x1   :  { %v9_v0 = vld [vmem:[%s96_s0] sm:$0x3] }
   0x2   :  { %11 = vrot.lane.b32.xlu0 %v9_v0, %s68_s8 }
   0x3   :  { %6 = vsyncpa [#allocation3], 0  ;;  %s69_s9 = smov 127   ;;  %vm14_vm0 = vcmask 7168   ;;  %vm21_vm1 = vcmask 121856   ;;  %s70_s10 = smov [#allocation2]  }
   0x4   :  { %s33_s11 = sshll.u32 %s70_s10, 4  ;;  %vm25_vm2 = vcmask 123904   ;;  %s34_s11 = int_to_ptr.vmem [resolvable:$true] %s33_s11 }
   0x5   :  { %s44_s0 = scalar_lea.vmem %s34_s11, 32  ;;  %p49_p1 = scmp.lt.s32.totalorder %s34_s11, %s34_s11 }
   0x6   :  { %18 = vrot.lane.b32.xlu0 %v9_v0, %s69_s9  ;;  %p45_p0 = scmp.ne.s32.totalorder %s34_s11, %s44_s0  ;;  %p50_p2 = scmp.lt.s32.totalorder %s44_s0, %s44_s0 }
   0x8   :  { %p51_p3 = por %p50_p2, %p49_p1 }
   0xa   :  { %p52_p4 = pnand %p51_p3, %p45_p0 }
  0x74   :  { %v12_v1 = vpop.permute.xlu0 %11 }
  0x75   :  { %v15_v2 = vsel %vm14_vm0, 0.0, %v12_v1 }
  0x76   :  { %v16_v5 = vmul.f32 0.5, %v15_v2 }
  0x78   :  { %v19_v3 = vpop.permute.xlu0 %18 }
  0x79   :  { %v22_v4 = vsel %vm21_vm1, %v19_v3, 0.0 }
  0x7a   :  { %v23_v6 = vmul.f32 0.5, %v22_v4 }
  0x7c   :  { %v24_v7 = vadd.f32 %v23_v6, %v16_v5 }
  0x7e   :  { %26 = vst.msk [vmem:[#allocation2] sm:$0x3] %vm25_vm2, %v24_v7 }
  0x7f   :  { %55 = shalt.err (!%p52_p4)
}
  0x80   :  { %s56_s14 = scalar_lea.hbm %s97_s1, 32 }
  0x81   :  { %p57_p5 = scmp.ne.s32.totalorder %s97_s1, %s56_s14  ;;  %p60_p6 = scmp.lt.u32.totalorder %s56_s14, %s97_s1 }
  0x83   :  { %p62_p7 = pnand %p60_p6, %p57_p5 }
  0x85   :  { %65 = shalt.err (!%p62_p7)
}
  0x86   :  { %36 = dma.vmem_to_hbm [thread:$0]  %s34_s11, 32, %s97_s1, [#allocation3]  }
  0x87   :  { %66 = dma.done.wait [#allocation3], 32  }
  0x88   :  { %67 = vsyncadd [#allocation3], 4294967264 }
  0x89   :  { %40 = vsyncpa [#allocation3], 1 }

</bundles_post_ra>
